<compile_context>
chip_gen: v7x
topology: tpu7x:2x2x1
jax: 0.10.0
libtpu: 0.0.40
codegen_flags: <defaults>
</compile_context>

<pallas_src>
import functools

import jax
import jax.numpy as jnp
from jax.experimental import pallas as pl
from jax.experimental.pallas import tpu as pltpu


def _round_up(x: int, m: int) -> int:
    return ((x + m - 1) // m) * m


def _cdiv(a: int, b: int) -> int:
    return (a + b - 1) // b


def _choose_tile(M: int, tm_max: int):
    """Pick the M-tile: multiple of 128, as large as tm_max, balanced/even tile count.

    Single tile when the whole (128-rounded) problem fits; otherwise split into an
    even number of near-equal tiles so a 2-TensorCore chip (v7x) gets balanced work.
    """
    tm_max = max(128, _round_up(tm_max, 128))
    m128 = _round_up(M, 128)
    if m128 <= tm_max:
        return m128, 1
    num_tiles = _cdiv(m128, tm_max)
    if num_tiles % 2:
        num_tiles += 1
    tm = _round_up(_cdiv(M, num_tiles), 128)
    return tm, _cdiv(M, tm)


def _fused_mlp_kernel(*refs, num_layers: int):
    # refs = (x_ref, w0, b0, w1, b1, ..., o_ref)
    #   x_ref: (C_in, tm)            -- lane-dense in M
    #   w_l  : (C_out_l, C_in_l)     b_l: (C_out_l, 1)
    #   o_ref: (C_out_last, tm)
    x_ref = refs[0]
    o_ref = refs[-1]
    wb = refs[1:-1]

    h = x_ref[...]
    for li in range(num_layers):
        w = wb[2 * li][...]
        b = wb[2 * li + 1][...]
        # 1x1 conv == per-pixel channel matmul: (C_out, C_in) @ (C_in, tm).
        h = jnp.dot(w, h, preferred_element_type=jnp.float32) + b
        if li < num_layers - 1:
            h = jnp.maximum(h, 0.0)
    o_ref[...] = h.astype(o_ref.dtype)


def unit_mlp_forward(x, params, *, tm: int = 65536):
    """x: (B, N, N, C_in) f32 -> (B, N, N, C_out) f32, all layers in one kernel."""
    B, N1, N2, C_in = x.shape
    M = B * N1 * N2
    num_layers = len(params)
    C_out = params[-1][0].shape[0]

    # Channels-major / lane-dense layout (the NCHW permute the PyTorch module implies).
    x_t = jnp.moveaxis(x, -1, 0).reshape(C_in, M).astype(jnp.float32)

    tm_eff, num_tiles = _choose_tile(M, tm)

    in_specs = [pl.BlockSpec((C_in, tm_eff), lambda i: (0, i))]
    flat_args = [x_t]
    for (w, b) in params:
        co, ci = w.shape
        in_specs.append(pl.BlockSpec((co, ci), lambda i: (0, 0)))
        in_specs.append(pl.BlockSpec((co, 1), lambda i: (0, 0)))
        flat_args.append(w.astype(jnp.float32))
        flat_args.append(b.reshape(co, 1).astype(jnp.float32))

    kernel = functools.partial(_fused_mlp_kernel, num_layers=num_layers)
    out_t = pl.pallas_call(
        kernel,
        # No padding / no post-slice: Pallas masks the ragged final tile's writes.
        out_shape=jax.ShapeDtypeStruct((C_out, M), jnp.float32),
        grid_spec=pltpu.PrefetchScalarGridSpec(
            num_scalar_prefetch=0,
            grid=(num_tiles,),
            in_specs=in_specs,
            out_specs=pl.BlockSpec((C_out, tm_eff), lambda i: (0, i)),
        ),
        compiler_params=pltpu.CompilerParams(
            dimension_semantics=("parallel",),
            # Large tiles + double buffering; 32 MiB covers v5e's 16 MiB scoped
            # default and is comfortably under v7x's 64 MiB physical VMEM.
            vmem_limit_bytes=32 * 1024 * 1024,
        ),
    )(*flat_args)

    return jnp.moveaxis(out_t.reshape(C_out, B, N1, N2), 0, -1)


def init_unit_mlp_params(key, in_feat: int, out_feat: int, num_layers: int):
    """Deterministic init mimicking nn.Conv2d default (kaiming-uniform-ish).

    Conv2d(in, out, (1,1)) weight shape is (out, in, 1, 1); we store the (out, in)
    matrix used by the fused kernel, plus bias (out,).
    """
    params = []
    feats = [in_feat] + [out_feat] * num_layers
    for li in range(num_layers):
        cin, cout = feats[li], feats[li + 1]
        key, kw, kb = jax.random.split(key, 3)
        bound = 1.0 / jnp.sqrt(jnp.float32(cin))  # fan_in = cin * 1 * 1
        w = jax.random.uniform(kw, (cout, cin), jnp.float32, -bound, bound)
        b = jax.random.uniform(kb, (cout,), jnp.float32, -bound, bound)
        params.append((w, b))
    return params


def _reference_forward(x, params):
    """Pure-JAX reference matching the PyTorch semantics (w stored as (out, in))."""
    h = x
    num_layers = len(params)
    for li, (w, b) in enumerate(params):
        h = jnp.einsum("bijc,oc->bijo", h, w) + b
        if li < num_layers - 1:
            h = jnp.maximum(h, 0.0)
    return h


if __name__ == "__main__":
    B, N, C_IN, C_OUT, NUM_LAYERS = 2, 24, 4, 8, 3  # M = 2*24*24 = 1152

    key = jax.random.PRNGKey(0)
    key, kx = jax.random.split(key)
    x = jax.random.normal(kx, (B, N, N, C_IN), jnp.float32)

    params = init_unit_mlp_params(key, C_IN, C_OUT, NUM_LAYERS)
    ref = _reference_forward(x, params)

    # 1) Default config: whole problem in a single large tile.
    out = jax.jit(unit_mlp_forward)(x, params)
    out = jax.block_until_ready(out)
    assert out.shape == (B, N, N, C_OUT)
    assert jnp.allclose(out, ref, atol=2e-5, rtol=2e-5), float(
        jnp.max(jnp.abs(out - ref)))

    # 2) Small tile to exercise the multi-tile grid and the ragged (masked) final block.
    out_small = jax.jit(functools.partial(unit_mlp_forward, tm=256))(x, params)
    out_small = jax.block_until_ready(out_small)
    assert jnp.allclose(out_small, ref, atol=2e-5, rtol=2e-5), float(
        jnp.max(jnp.abs(out_small - ref)))

    print("KERNEL_OK")
</pallas_src>

<mosaic_0001>
module attributes {stable_mosaic.version = 11 : i64} {
  func.func @_fused_mlp_kernel(%arg0: i32, %arg1: memref<4x1152xf32, #tpu.memory_space<vmem>>, %arg2: memref<8x4xf32, #tpu.memory_space<vmem>>, %arg3: memref<8x1xf32, #tpu.memory_space<vmem>>, %arg4: memref<8x8xf32, #tpu.memory_space<vmem>>, %arg5: memref<8x1xf32, #tpu.memory_space<vmem>>, %arg6: memref<8x8xf32, #tpu.memory_space<vmem>>, %arg7: memref<8x1xf32, #tpu.memory_space<vmem>>, %arg8: memref<8x1152xf32, #tpu.memory_space<vmem>>) attributes {dimension_semantics = [#tpu.dimension_semantics<parallel>], iteration_bounds = array<i64: 1>, scalar_prefetch = 0 : i64, scratch_operands = 0 : i64, tpu.core_type = #tpu.core_type<tc>, window_params = [{transform_indices = @transform_0, window_bounds = array<i64: 4, 1152>}, {pipeline_mode = #tpu.pipeline_mode<synchronous>, transform_indices = @transform_1, window_bounds = array<i64: 8, 4>}, {pipeline_mode = #tpu.pipeline_mode<synchronous>, transform_indices = @transform_2, window_bounds = array<i64: 8, 1>}, {pipeline_mode = #tpu.pipeline_mode<synchronous>, transform_indices = @transform_3, window_bounds = array<i64: 8, 8>}, {pipeline_mode = #tpu.pipeline_mode<synchronous>, transform_indices = @transform_4, window_bounds = array<i64: 8, 1>}, {pipeline_mode = #tpu.pipeline_mode<synchronous>, transform_indices = @transform_5, window_bounds = array<i64: 8, 8>}, {pipeline_mode = #tpu.pipeline_mode<synchronous>, transform_indices = @transform_6, window_bounds = array<i64: 8, 1>}, {transform_indices = @transform_7, window_bounds = array<i64: 8, 1152>}]} {
    %c0 = arith.constant 0 : index
    %c0_0 = arith.constant 0 : index
    %0 = vector.load %arg1[%c0, %c0_0] : memref<4x1152xf32, #tpu.memory_space<vmem>>, vector<4x1152xf32>
    %c0_1 = arith.constant 0 : index
    %c0_2 = arith.constant 0 : index
    %1 = vector.load %arg2[%c0_1, %c0_2] : memref<8x4xf32, #tpu.memory_space<vmem>>, vector<8x4xf32>
    %c0_3 = arith.constant 0 : index
    %c0_4 = arith.constant 0 : index
    %2 = vector.load %arg3[%c0_3, %c0_4] : memref<8x1xf32, #tpu.memory_space<vmem>>, vector<8x1xf32>
    %cst = arith.constant dense<0.000000e+00> : vector<8x1152xf32>
    %3 = tpu.matmul %1, %0, %cst {dimension_numbers = #tpu.dot_dimension_numbers<[1], [0], [0], [1], [0, 0, 1, 1], [], []>} : vector<8x4xf32>, vector<4x1152xf32>, vector<8x1152xf32> -> vector<8x1152xf32>
    %4 = vector.broadcast %2 : vector<8x1xf32> to vector<8x1152xf32>
    %5 = arith.addf %3, %4 : vector<8x1152xf32>
    %cst_5 = arith.constant 0.000000e+00 : f32
    %6 = vector.broadcast %cst_5 : f32 to vector<8x1152xf32>
    %7 = arith.maximumf %5, %6 : vector<8x1152xf32>
    %c0_6 = arith.constant 0 : index
    %c0_7 = arith.constant 0 : index
    %8 = vector.load %arg4[%c0_6, %c0_7] : memref<8x8xf32, #tpu.memory_space<vmem>>, vector<8x8xf32>
    %c0_8 = arith.constant 0 : index
    %c0_9 = arith.constant 0 : index
    %9 = vector.load %arg5[%c0_8, %c0_9] : memref<8x1xf32, #tpu.memory_space<vmem>>, vector<8x1xf32>
    %cst_10 = arith.constant dense<0.000000e+00> : vector<8x1152xf32>
    %10 = tpu.matmul %8, %7, %cst_10 {dimension_numbers = #tpu.dot_dimension_numbers<[1], [0], [0], [1], [0, 0, 1, 1], [], []>} : vector<8x8xf32>, vector<8x1152xf32>, vector<8x1152xf32> -> vector<8x1152xf32>
    %11 = vector.broadcast %9 : vector<8x1xf32> to vector<8x1152xf32>
    %12 = arith.addf %10, %11 : vector<8x1152xf32>
    %cst_11 = arith.constant 0.000000e+00 : f32
    %13 = vector.broadcast %cst_11 : f32 to vector<8x1152xf32>
    %14 = arith.maximumf %12, %13 : vector<8x1152xf32>
    %c0_12 = arith.constant 0 : index
    %c0_13 = arith.constant 0 : index
    %15 = vector.load %arg6[%c0_12, %c0_13] : memref<8x8xf32, #tpu.memory_space<vmem>>, vector<8x8xf32>
    %c0_14 = arith.constant 0 : index
    %c0_15 = arith.constant 0 : index
    %16 = vector.load %arg7[%c0_14, %c0_15] : memref<8x1xf32, #tpu.memory_space<vmem>>, vector<8x1xf32>
    %cst_16 = arith.constant dense<0.000000e+00> : vector<8x1152xf32>
    %17 = tpu.matmul %15, %14, %cst_16 {dimension_numbers = #tpu.dot_dimension_numbers<[1], [0], [0], [1], [0, 0, 1, 1], [], []>} : vector<8x8xf32>, vector<8x1152xf32>, vector<8x1152xf32> -> vector<8x1152xf32>
    %18 = vector.broadcast %16 : vector<8x1xf32> to vector<8x1152xf32>
    %19 = arith.addf %17, %18 : vector<8x1152xf32>
    %c0_17 = arith.constant 0 : index
    %c0_18 = arith.constant 0 : index
    %20 = vector.load %arg8[%c0_17, %c0_18] : memref<8x1152xf32, #tpu.memory_space<vmem>>, vector<8x1152xf32>
    tpu.vector_store %arg8[%c0_17, %c0_18], %19 {strides = array<i32>} : memref<8x1152xf32, #tpu.memory_space<vmem>>, vector<8x1152xf32>,
    return
  }
  func.func @transform_0(%arg0: i32) -> (i32, i32) {
    %c0_i32 = arith.constant 0 : i32
    %c0_i32_0 = arith.constant 0 : i32
    return %c0_i32, %arg0 : i32, i32
  }
  func.func @transform_1(%arg0: i32) -> (i32, i32) {
    %c0_i32 = arith.constant 0 : i32
    %c0_i32_0 = arith.constant 0 : i32
    %c0_i32_1 = arith.constant 0 : i32
    return %c0_i32, %c0_i32_0 : i32, i32
  }
  func.func @transform_2(%arg0: i32) -> (i32, i32) {
    %c0_i32 = arith.constant 0 : i32
    %c0_i32_0 = arith.constant 0 : i32
    %c0_i32_1 = arith.constant 0 : i32
    return %c0_i32, %c0_i32_0 : i32, i32
  }
  func.func @transform_3(%arg0: i32) -> (i32, i32) {
    %c0_i32 = arith.constant 0 : i32
    %c0_i32_0 = arith.constant 0 : i32
    %c0_i32_1 = arith.constant 0 : i32
    return %c0_i32, %c0_i32_0 : i32, i32
  }
  func.func @transform_4(%arg0: i32) -> (i32, i32) {
    %c0_i32 = arith.constant 0 : i32
    %c0_i32_0 = arith.constant 0 : i32
    %c0_i32_1 = arith.constant 0 : i32
    return %c0_i32, %c0_i32_0 : i32, i32
  }
  func.func @transform_5(%arg0: i32) -> (i32, i32) {
    %c0_i32 = arith.constant 0 : i32
    %c0_i32_0 = arith.constant 0 : i32
    %c0_i32_1 = arith.constant 0 : i32
    return %c0_i32, %c0_i32_0 : i32, i32
  }
  func.func @transform_6(%arg0: i32) -> (i32, i32) {
    %c0_i32 = arith.constant 0 : i32
    %c0_i32_0 = arith.constant 0 : i32
    %c0_i32_1 = arith.constant 0 : i32
    return %c0_i32, %c0_i32_0 : i32, i32
  }
  func.func @transform_7(%arg0: i32) -> (i32, i32) {
    %c0_i32 = arith.constant 0 : i32
    %c0_i32_0 = arith.constant 0 : i32
    return %c0_i32, %arg0 : i32, i32
  }
}

</mosaic_0001>

<bundles_post_ra>
// kernel: unit_mlp_forward.1
= control target key start
LH: loop header
LB: loop body
LE: loop exit
PB: predicated region body
PF: predicated region fallthrough
CT: control target
= control target key end

     0   :  { %vm51_vm0 = vcmask 1043456   ;;  %v1238_v2 = vmov 0.0   ;;  %v1239_v7 = vmov 0   ;;  %vm47_vm1 = vcmask 31744   ;;  %s1386_s0 = inlined_call_operand.vmem [shape: f32[4,1152], index: 0, kind: input, shape index: {}]   ;;  %s1387_s1 = inlined_call_operand.vmem [shape: f32[8,4], index: 1, kind: input, shape index: {}]   ;;  %s1388_s2 = inlined_call_operand.vmem [shape: f32[8,1], index: 2, kind: input, shape index: {}]   ;;  %s1389_s4 = inlined_call_operand.vmem [shape: f32[8,1], index: 4, kind: input, shape index: {}]   ;;  %s1390_s3 = inlined_call_operand.vmem [shape: f32[8,8], index: 3, kind: input, shape index: {}]   ;;  %s1391_s6 = inlined_call_operand.vmem [shape: f32[8,1], index: 6, kind: input, shape index: {}]   ;;  %s1392_s5 = inlined_call_operand.vmem [shape: f32[8,8], index: 5, kind: input, shape index: {}]   ;;  %s1393_s7 = inlined_call_operand.vmem [shape: f32[8,1152], index: 7, kind: output, shape index: {}]  }
   0x1   :  { %v26_v0 = vld [vmem:[%s1386_s0] sm:$0xff]  ;;  %v27_v1 = vld [vmem:[%s1386_s0 + $0x8] sm:$0xff]  ;;  %134 = vmatprep.mubr.f32.mxu0 %v1238_v2  ;;  %205 = vmatprep.mubr.f32.mxu1 %v1238_v2  ;;  %v28_v5 = vld [vmem:[%s1386_s0 + $0x10] sm:$0xff]  ;;  %vm1240_vm2 = vmmov 0   ;;  %vm440_vm3 = vcmask 64512  }
   0x2   :  { %v43_v3 = vcombine.high %v26_v0, %v26_v0  ;;  %v44_v4 = vcombine.high %v27_v1, %v27_v1  ;;  %v29_v6 = vld [vmem:[%s1386_s0 + $0x18] sm:$0xff]  ;;  %1232 = vset.pattern.permute.xlu0 %v1239_v7  ;;  %1233 = vset.pattern.permute.xlu1 %v1239_v7  ;;  %v31_v8 = vld [vmem:[%s1387_s1] sm:$0xff]  ;;  %v45_v9 = vcombine.high %v28_v5, %v28_v5 }
   0x3   :  { %v46_v10 = vcombine.high %v29_v6, %v29_v6  ;;  %v30_v11 = vld [vmem:[%s1386_s0 + $0x20] sm:$0xf] }
   0x4   :  { %1184 = vmatprep.subr.msk.mxu0 %vm51_vm0, %v43_v3  ;;  %1187 = vmatprep.subr.msk.mxu1 %vm51_vm0, %v44_v4  ;;  %v32_v12 = vld [vmem:[%s1388_s2] sm:$0xff] }
   0x5   :  { %1185 = vmatpush1.msk.msra.mxu0 %vm51_vm0, %v26_v0  ;;  %1188 = vmatpush1.msk.msra.mxu1 %vm51_vm0, %v27_v1  ;;  %v434_v13 = vld [vmem:[%s1389_s4] sm:$0xff] }
   0x6   :  { %1186 = vmatmul.mubr.msk.f32.vlgmr.msra.gmra.mrb[0].mxu0 %vm47_vm1, %v31_v8  ;;  %1189 = vmatmul.mubr.msk.f32.vlgmr.msra.gmra.mrb[0].mxu1 %vm47_vm1, %v31_v8  ;;  %v433_v33 = vld [vmem:[%s1390_s3] sm:$0xff] }
   0x7   :  { %1190 = vmatprep.subr.msk.mxu0 %vm51_vm0, %v45_v9  ;;  %1193 = vmatprep.subr.msk.mxu1 %vm51_vm0, %v46_v10  ;;  %v808_v44 = vld [vmem:[%s1391_s6] sm:$0xff] }
   0x8   :  { %1191 = vmatpush1.msk.msra.mxu0 %vm51_vm0, %v28_v5  ;;  %276 = vmatprep.mubr.f32.mxu0 %v1238_v2  ;;  %v807_v0 = vld [vmem:[%s1392_s5] sm:$0xff] }
   0x9   :  { %1194 = vmatpush1.msk.msra.mxu1 %vm51_vm0, %v29_v6  ;;  %347 = vmatprep.mubr.f32.mxu1 %v1238_v2 }
   0xa   :  { %1192 = vmatmul.mubr.msk.f32.vlgmr.msra.gmra.mrb[2].mxu0 %vm47_vm1, %v31_v8  ;;  %1195 = vmatmul.mubr.msk.f32.vlgmr.msra.gmra.mrb[2].mxu1 %vm47_vm1, %v31_v8 }
   0xb   :  { %1214 = vmatprep.subr.mxu0 %v1238_v2  ;;  %1216 = vmatprep.mubr.msk.f32.mxu0 %vm1240_vm2, %v1238_v2 }
   0xc   :  { %1215 = vmatpush3.msk.msra.mxu0 %vm51_vm0, %v30_v11  ;;  %35 = vperm.xlu0 %1232, %v32_v12  }
   0xd   :  { %508 = vmatprep.mubr.f32.mxu1 %v1238_v2  ;;  %811 = vperm.xlu1 %1233, %v808_v44  }
   0xe   :  { %1217 = vmatmul.mubr.msk.f32.vlgmr.msra.gmra.mrb[4].mxu0 %vm47_vm1, %v31_v8 }
   0xf   :  { %579 = vmatprep.mubr.f32.mxu0 %v1238_v2 }
  0x10   :  { %437 = vperm.xlu0 %1232, %v434_v13  }
  0x8b   :  { %v36_v14 = vpop.permute.xlu0 %35 }
  0x8c   :  { %v812_v12 = vpop.permute.xlu1 %811 }
  0x8f   :  { %v438_v45 = vpop.permute.xlu0 %437 }
  0xd9   :  { %v136_v15 = vpop.f32.mrb[0].mxu0  ;;  %v207_v16 = vpop.f32.mrb[0].mxu1 }
  0xda   :  { %v137_v17 = vadd.f32 %v136_v15, %v36_v14  ;;  %v208_v18 = vadd.f32 %v207_v16, %v36_v14  ;;  %v138_v19 = vpop.f32.mrb[1].mxu0  ;;  %v209_v20 = vpop.f32.mrb[1].mxu1 }
  0xdb   :  { %v139_v21 = vadd.f32 %v138_v19, %v36_v14  ;;  %v210_v22 = vadd.f32 %v209_v20, %v36_v14 }
  0xdc   :  { %v426_v23 = vmax.f32 %v208_v18, 0.0  ;;  %v424_v28 = vmax.f32 %v137_v17, 0.0 }
  0xdd   :  { %v425_v24 = vmax.f32 %v139_v21, 0.0  ;;  %v427_v25 = vmax.f32 %v210_v22, 0.0  ;;  %v278_v26 = vpop.f32.mrb[2].mxu0  ;;  %v349_v27 = vpop.f32.mrb[2].mxu1 }
  0xde   :  { %v279_v29 = vadd.f32 %v278_v26, %v36_v14  ;;  %v350_v30 = vadd.f32 %v349_v27, %v36_v14  ;;  %v280_v31 = vpop.f32.mrb[3].mxu0  ;;  %v351_v32 = vpop.f32.mrb[3].mxu1 }
  0xdf   :  { %v281_v34 = vadd.f32 %v280_v31, %v36_v14  ;;  %v352_v35 = vadd.f32 %v351_v32, %v36_v14  ;;  %444 = vmatprep.subr.mxu1 %v425_v24  ;;  %515 = vmatprep.subr.mxu0 %v427_v25 }
  0xe0   :  { %445 = vmatpush1.msra.mxu1 %v424_v28  ;;  %516 = vmatpush1.msra.mxu0 %v426_v23  ;;  %v428_v39 = vmax.f32 %v279_v29, 0.0  ;;  %v430_v40 = vmax.f32 %v350_v30, 0.0 }
  0xe1   :  { %v429_v36 = vmax.f32 %v281_v34, 0.0  ;;  %v431_v37 = vmax.f32 %v352_v35, 0.0  ;;  %v420_v38 = vpop.f32.mrb[4].mxu0  ;;  %1198 = vmatmul.mubr.msk.f32.vlgmr.msra.gmra.mrb[4].mxu1 %vm440_vm3, %v433_v33  ;;  %1199 = vmatmul.mubr.msk.f32.vlgmr.msra.gmra.mrb[6].mxu0 %vm440_vm3, %v433_v33 }
  0xe2   :  { %v421_v41 = vadd.f32 %v420_v38, %v36_v14  ;;  %650 = vmatprep.mubr.f32.mxu1 %v1238_v2  ;;  %721 = vmatprep.mubr.f32.mxu0 %v1238_v2  ;;  %v1218_v42 = vpop.f32.mrb[5].mxu0 }
  0xe3   :  { %586 = vmatprep.subr.mxu1 %v429_v36  ;;  %657 = vmatprep.subr.mxu0 %v431_v37 }
  0xe4   :  { %v432_v43 = vmax.f32 %v421_v41, 0.0  ;;  %587 = vmatpush1.msra.mxu1 %v428_v39  ;;  %658 = vmatpush1.msra.mxu0 %v430_v40 }
  0xe5   :  { %1200 = vmatmul.mubr.msk.f32.vlgmr.msra.gmra.mrb[6].mxu1 %vm440_vm3, %v433_v33  ;;  %1201 = vmatmul.mubr.msk.f32.vlgmr.msra.gmra.mrb[8].mxu0 %vm440_vm3, %v433_v33 }
  0xe6   :  { %1219 = vmatprep.subr.mxu1 %v1238_v2  ;;  %1221 = vmatprep.mubr.msk.f32.mxu1 %vm1240_vm2, %v1238_v2 }
  0xe7   :  { %1220 = vmatpush3.msra.mxu1 %v432_v43  ;;  %881 = vmatprep.mubr.f32.mxu0 %v1238_v2 }
  0xe9   :  { %1222 = vmatmul.mubr.msk.f32.vlgmr.msra.gmra.mrb[8].mxu1 %vm440_vm3, %v433_v33 }
  0xea   :  { %952 = vmatprep.mubr.f32.mxu1 %v1238_v2 }
 0x1b4   :  { %v510_v46 = vpop.f32.mrb[4].mxu1  ;;  %v581_v47 = vpop.f32.mrb[6].mxu0 }
 0x1b5   :  { %v511_v48 = vadd.f32 %v510_v46, %v438_v45  ;;  %v582_v49 = vadd.f32 %v581_v47, %v438_v45  ;;  %v512_v50 = vpop.f32.mrb[5].mxu1  ;;  %v583_v51 = vpop.f32.mrb[7].mxu0 }
 0x1b6   :  { %v513_v52 = vadd.f32 %v512_v50, %v438_v45  ;;  %v584_v53 = vadd.f32 %v583_v51, %v438_v45 }
 0x1b7   :  { %v798_v58 = vmax.f32 %v511_v48, 0.0  ;;  %v800_v59 = vmax.f32 %v582_v49, 0.0 }
 0x1b8   :  { %v799_v54 = vmax.f32 %v513_v52, 0.0  ;;  %v801_v55 = vmax.f32 %v584_v53, 0.0  ;;  %v652_v56 = vpop.f32.mrb[6].mxu1  ;;  %v723_v57 = vpop.f32.mrb[8].mxu0 }
 0x1b9   :  { %v653_v60 = vadd.f32 %v652_v56, %v438_v45  ;;  %v724_v61 = vadd.f32 %v723_v57, %v438_v45  ;;  %v654_v62 = vpop.f32.mrb[7].mxu1  ;;  %v725_v63 = vpop.f32.mrb[9].mxu0 }
 0x1ba   :  { %v655_v1 = vadd.f32 %v654_v62, %v438_v45  ;;  %v726_v3 = vadd.f32 %v725_v63, %v438_v45  ;;  %817 = vmatprep.subr.mxu0 %v799_v54  ;;  %888 = vmatprep.subr.mxu1 %v801_v55 }
 0x1bb   :  { %818 = vmatpush1.msra.mxu0 %v798_v58  ;;  %889 = vmatpush1.msra.mxu1 %v800_v59  ;;  %v802_v7 = vmax.f32 %v653_v60, 0.0  ;;  %v804_v8 = vmax.f32 %v724_v61, 0.0 }
 0x1bc   :  { %v803_v4 = vmax.f32 %v655_v1, 0.0  ;;  %v805_v5 = vmax.f32 %v726_v3, 0.0  ;;  %v794_v6 = vpop.f32.mrb[8].mxu1  ;;  %1203 = vmatmul.mubr.msk.f32.vlgmr.msra.gmra.mrb[10].mxu0 %vm440_vm3, %v807_v0  ;;  %1204 = vmatmul.mubr.msk.f32.vlgmr.msra.gmra.mrb[10].mxu1 %vm440_vm3, %v807_v0 }
 0x1bd   :  { %v795_v9 = vadd.f32 %v794_v6, %v438_v45  ;;  %v1223_v10 = vpop.f32.mrb[9].mxu1  ;;  %1023 = vmatprep.mubr.f32.mxu0 %v1238_v2  ;;  %1094 = vmatprep.mubr.f32.mxu1 %v1238_v2 }
 0x1be   :  { %959 = vmatprep.subr.mxu0 %v803_v4  ;;  %1030 = vmatprep.subr.mxu1 %v805_v5 }
 0x1bf   :  { %v806_v11 = vmax.f32 %v795_v9, 0.0  ;;  %960 = vmatpush1.msra.mxu0 %v802_v7  ;;  %1031 = vmatpush1.msra.mxu1 %v804_v8 }
 0x1c0   :  { %1224 = vmatprep.subr.mxu0 %v1238_v2  ;;  %1205 = vmatmul.mubr.msk.f32.vlgmr.msra.gmra.mrb[12].mxu0 %vm440_vm3, %v807_v0 }
 0x1c1   :  { %1225 = vmatpush3.msra.mxu0 %v806_v11  ;;  %1206 = vmatmul.mubr.msk.f32.vlgmr.msra.gmra.mrb[12].mxu1 %vm440_vm3, %v807_v0 }
 0x1c2   :  { %1226 = vmatprep.mubr.msk.f32.mxu0 %vm1240_vm2, %v1238_v2 }
 0x1c4   :  { %1227 = vmatmul.mubr.msk.f32.vlgmr.msra.gmra.mrb[14].mxu0 %vm440_vm3, %v807_v0 }
 0x28f   :  { %v883_v13 = vpop.f32.mrb[10].mxu0  ;;  %v954_v14 = vpop.f32.mrb[10].mxu1 }
 0x290   :  { %v884_v15 = vadd.f32 %v883_v13, %v812_v12  ;;  %v885_v16 = vpop.f32.mrb[11].mxu0  ;;  %v955_v17 = vadd.f32 %v954_v14, %v812_v12  ;;  %v956_v18 = vpop.f32.mrb[11].mxu1 }
 0x291   :  { %v886_v19 = vadd.f32 %v885_v16, %v812_v12  ;;  %v957_v20 = vadd.f32 %v956_v18, %v812_v12 }
 0x292   :  { %1171 = vst [vmem:[%s1393_s7] sm:$0xff] %v884_v15  ;;  %1173 = vst [vmem:[%s1393_s7 + $0x10] sm:$0xff] %v955_v17 }
 0x293   :  { %1172 = vst [vmem:[%s1393_s7 + $0x8] sm:$0xff] %v886_v19  ;;  %1174 = vst [vmem:[%s1393_s7 + $0x18] sm:$0xff] %v957_v20  ;;  %v1025_v2 = vpop.f32.mrb[12].mxu0 }
 0x294   :  { %v1026_v21 = vadd.f32 %v1025_v2, %v812_v12  ;;  %v1027_v22 = vpop.f32.mrb[13].mxu0  ;;  %v1096_v23 = vpop.f32.mrb[12].mxu1 }
 0x295   :  { %v1028_v24 = vadd.f32 %v1027_v22, %v812_v12  ;;  %v1097_v25 = vadd.f32 %v1096_v23, %v812_v12  ;;  %v1098_v26 = vpop.f32.mrb[13].mxu1 }
 0x296   :  { %1175 = vst [vmem:[%s1393_s7 + $0x20] sm:$0xff] %v1026_v21  ;;  %v1099_v27 = vadd.f32 %v1098_v26, %v812_v12 }
 0x297   :  { %1176 = vst [vmem:[%s1393_s7 + $0x28] sm:$0xff] %v1028_v24  ;;  %1177 = vst [vmem:[%s1393_s7 + $0x30] sm:$0xff] %v1097_v25  ;;  %v1167_v28 = vpop.f32.mrb[14].mxu0 }
 0x298   :  { %1178 = vst [vmem:[%s1393_s7 + $0x38] sm:$0xff] %v1099_v27  ;;  %v1168_v29 = vadd.f32 %v1167_v28, %v812_v12  ;;  %v1228_v30 = vpop.f32.mrb[15].mxu0 }
 0x29a   :  { %1179 = vst [vmem:[%s1393_s7 + $0x40] sm:$0xff] %v1168_v29 }

</bundles_post_ra>
